<compile_context>
chip_gen: v6e
topology: v6e:2x2x1
jax: 0.10.0
libtpu: 0.0.40
codegen_flags: <defaults>
</compile_context>

<pallas_src>
import jax
import jax.numpy as jnp
from jax.experimental import pallas as pl
from jax.experimental.pallas import tpu as pltpu


def _round_up(n, m):
    return ((n + m - 1) // m) * m


def _value_head_kernel(x_ref, w1_ref, b1_ref, w2_ref, b2_ref, out_ref, acc_ref):
    """One (batch_tile i, n_tile j) grid step.

    x_ref  : [TB, Dp] compute dtype     w1_ref : [Dp, TN] compute dtype
    b1_ref : [1, TN]  f32               w2_ref : [1, TN]  f32
    b2_ref : [1, 1]   f32 (SMEM)        out_ref: [TB, 1]  f32
    acc_ref: [TB, 1]  f32 scratch (partial second-projection sums)
    """
    j = pl.program_id(1)

    @pl.when(j == 0)
    def _():
        acc_ref[...] = jnp.zeros_like(acc_ref)

    # Linear 1 (this N chunk) on the MXU with f32 accumulation; bias + ReLU on
    # the VPU.
    h = jnp.dot(x_ref[...], w1_ref[...], preferred_element_type=jnp.float32)
    h = jnp.maximum(h + b1_ref[...], 0.0)

    # Linear 2 (out_features == 1): VPU multiply + lane reduction accumulated
    # per batch tile (keepdims -> (TB, 1), no sublane->lane relayout).
    acc_ref[...] += jnp.sum(h * w2_ref[...], axis=-1, keepdims=True)

    @pl.when(j == pl.num_programs(1) - 1)
    def _():
        out_ref[...] = jnp.tanh(acc_ref[...] + b2_ref[0, 0]).astype(out_ref.dtype)


def _choose_tiles(B, D, cdt):
    LANE = 128
    SUB = 16 if cdt == jnp.dtype(jnp.bfloat16) else 8
    Dp = D if D % LANE == 0 else _round_up(D, LANE)

    # N tile: keep (possibly double-buffered) (Dp, TN) w1 tiles within ~24 MiB
    # so large emb_dim never needs a fully resident Dp x Dp w1.
    w1_tile_budget = 24 * 1024 * 1024
    tn_max = max(LANE, w1_tile_budget // (2 * Dp * cdt.itemsize))
    if Dp <= tn_max:
        TN, Np = Dp, Dp
    else:
        TN = max(256, (tn_max // 256) * 256)          # multiple of 256 (MXU width)
        Np = _round_up(Dp, TN)
    nn = Np // TN

    # Batch tile: scale with the remaining VMEM budget (double-buffered x tile
    # + f32 h chunk), capped at 1024 rows.
    x_h_budget = 16 * 1024 * 1024
    per_row = 2 * Dp * cdt.itemsize + TN * 4
    tb_cap = max(SUB, min(1024, (x_h_budget // per_row) // SUB * SUB))
    if B <= tb_cap:
        TB = _round_up(B, SUB)
    else:
        TB = max(256, (tb_cap // 256) * 256) if tb_cap >= 256 else tb_cap
    Bp = _round_up(B, TB)
    nb = Bp // TB
    # v7x megacore: keep >= 2 tiles on the "parallel" batch axis when the batch
    # is large enough to be worth splitting across the two TensorCores.
    if nb == 1 and B > 256:
        TB = _round_up((B + 1) // 2, SUB)
        Bp = _round_up(B, TB)
        nb = Bp // TB
    return Dp, Np, TN, nn, TB, Bp, nb


def value_head_forward(x, w1, b1, w2, b2, *, compute_dtype=jnp.bfloat16):
    """ValueHead forward: tanh(relu(x @ w1 + b1) @ w2 + b2).

    x:  [B, D]  activations (float32)
    w1: [D, D]  first linear weight stored [in, out] (transposed vs nn.Linear.weight)
    b1: [D]     first bias
    w2: [D, 1]  second linear weight ([in, out]);  b2: [1]
    Returns [B, 1] float32.

    NOTE: the first matmul runs in `compute_dtype` (bf16 by default) with f32
    MXU accumulation -- an explicit, documented precision choice for a value head.
    """
    B, D = x.shape
    cdt = jnp.dtype(compute_dtype)
    Dp, Np, TN, nn, TB, Bp, nb = _choose_tiles(B, D, cdt)

    # --- operand preparation (padded rows/cols contribute exactly 0) --------
    # x: cast, pad only when actually needed (no full zeros().at[].set copy;
    # padding is skipped entirely when D % 128 == 0 and B % TB == 0).
    x_c = x.astype(cdt)
    if Bp != B or Dp != D:
        x_c = jnp.pad(x_c, ((0, Bp - B), (0, Dp - D)))
    # Weights/biases are tiny; in a real model pad & cast them once at init and
    # reuse across calls instead of re-materializing per forward.
    w1_c = w1.astype(cdt)
    if Dp != D or Np != D:
        w1_c = jnp.pad(w1_c, ((0, Dp - D), (0, Np - D)))
    b1_p = jnp.pad(b1.astype(jnp.float32), (0, Np - D)).reshape(1, Np)
    w2_p = jnp.pad(w2.reshape(-1).astype(jnp.float32), (0, Np - D)).reshape(1, Np)
    b2_p = b2.reshape(1, 1).astype(jnp.float32)

    # --- VMEM budget & compiler params (always set the scoped limit) --------
    w1_bufs = 1 if nn == 1 else 2                   # resident tiles: 1 buffer
    vmem_est = (2 * TB * Dp * cdt.itemsize          # x tiles (double-buffered)
                + w1_bufs * Dp * TN * cdt.itemsize  # w1 tiles
                + w1_bufs * 2 * TN * 4              # b1 + w2 tiles
                + 3 * TB * 128 * 4                  # out tiles + acc scratch (lane-padded)
                + TB * TN * 4)                      # f32 h chunk
    try:
        info = pltpu.get_tpu_info()
        phys_vmem = getattr(info, "vmem_capacity_bytes", 64 * 1024 * 1024)
    except Exception:
        phys_vmem = 64 * 1024 * 1024                # conservative (v7x per-TC)
    vmem_limit = int(min(max(int(1.3 * vmem_est), 32 * 1024 * 1024),
                         phys_vmem - 8 * 1024 * 1024))

    # Grid-constant operands are single-buffered when fully resident (nn == 1);
    # streamed N tiles keep the default double-buffering for DMA/compute overlap.
    res_mode = dict(pipeline_mode=pl.Buffered(1)) if nn == 1 else {}

    cost = pl.CostEstimate(
        flops=2 * B * D * D + 2 * B * D,
        transcendentals=B,
        bytes_accessed=(B * D + D * D + 2 * D + 1 + B) * 4,
    )

    out = pl.pallas_call(
        _value_head_kernel,
        out_shape=jax.ShapeDtypeStruct((Bp, 1), jnp.float32),
        grid=(nb, nn),
        in_specs=[
            pl.BlockSpec((TB, Dp), lambda i, j: (i, 0)),              # x tile
            pl.BlockSpec((Dp, TN), lambda i, j: (0, j), **res_mode),  # w1 N-tile
            pl.BlockSpec((1, TN), lambda i, j: (0, j), **res_mode),   # b1 chunk
            pl.BlockSpec((1, TN), lambda i, j: (0, j), **res_mode),   # w2 chunk
            pl.BlockSpec(memory_space=pltpu.MemorySpace.SMEM),        # b2 scalar
        ],
        out_specs=pl.BlockSpec((TB, 1), lambda i, j: (i, 0)),
        scratch_shapes=[pltpu.VMEM((TB, 1), jnp.float32)],
        compiler_params=pltpu.CompilerParams(
            dimension_semantics=("parallel", "arbitrary"),
            vmem_limit_bytes=vmem_limit),
        cost_estimate=cost,
    )(x_c, w1_c, b1_p, w2_p, b2_p)

    return out[:B]


def _reference(x, w1, b1, w2, b2):
    h = jnp.maximum(x @ w1 + b1, 0.0)
    return jnp.tanh(h @ w2 + b2)


if __name__ == "__main__":
    emb_dim = 64
    batch = 8

    key = jax.random.PRNGKey(0)
    k_x, k_w1, k_b1, k_w2, k_b2 = jax.random.split(key, 5)

    bound = 1.0 / (emb_dim ** 0.5)
    x = jax.random.normal(k_x, (batch, emb_dim), dtype=jnp.float32)
    # Weights stored as [D_in, D_out] (transposed relative to nn.Linear.weight).
    w1 = jax.random.uniform(k_w1, (emb_dim, emb_dim), jnp.float32, -bound, bound)
    b1 = jax.random.uniform(k_b1, (emb_dim,), jnp.float32, -bound, bound)
    w2 = jax.random.uniform(k_w2, (emb_dim, 1), jnp.float32, -bound, bound)
    b2 = jax.random.uniform(k_b2, (1,), jnp.float32, -bound, bound)

    ref = _reference(x, w1, b1, w2, b2)

    # f32 compute path.
    out_f32 = jax.block_until_ready(
        value_head_forward(x, w1, b1, w2, b2, compute_dtype=jnp.float32))
    assert out_f32.shape == (batch, 1), out_f32.shape
    assert jnp.allclose(out_f32, ref, atol=2e-2), "f32 path mismatch vs reference"

    # bf16 compute path (default): looser tolerance (explicit precision choice).
    out_bf16 = jax.block_until_ready(value_head_forward(x, w1, b1, w2, b2))
    assert out_bf16.shape == (batch, 1), out_bf16.shape
    assert jnp.allclose(out_bf16, ref, atol=5e-2), "bf16 path mismatch vs reference"

    print("KERNEL_OK")
</pallas_src>

<mosaic_0001>
module attributes {stable_mosaic.version = 11 : i64} {
  func.func @_value_head_kernel(%arg0: i32, %arg1: i32, %arg2: memref<8x128xf32, #tpu.memory_space<vmem>>, %arg3: memref<128x128xf32, #tpu.memory_space<vmem>>, %arg4: memref<1x128xf32, #tpu.memory_space<vmem>>, %arg5: memref<1x128xf32, #tpu.memory_space<vmem>>, %arg6: memref<1x1xf32, #tpu.memory_space<smem>>, %arg7: memref<8x1xf32, #tpu.memory_space<vmem>>, %arg8: memref<8x1xf32, #tpu.memory_space<vmem>>) attributes {dimension_semantics = [#tpu.dimension_semantics<parallel>, #tpu.dimension_semantics<arbitrary>], iteration_bounds = array<i64: 1, 1>, scalar_prefetch = 0 : i64, scratch_operands = 1 : i64, tpu.core_type = #tpu.core_type<tc>, window_params = [{transform_indices = @transform_0, window_bounds = array<i64: 8, 128>}, {pipeline_mode = #tpu.pipeline_mode<synchronous>, transform_indices = @transform_1, window_bounds = array<i64: 128, 128>}, {pipeline_mode = #tpu.pipeline_mode<synchronous>, transform_indices = @transform_2, window_bounds = array<i64: 1, 128>}, {pipeline_mode = #tpu.pipeline_mode<synchronous>, transform_indices = @transform_3, window_bounds = array<i64: 1, 128>}, {transform_indices = @transform_4, window_bounds = array<i64: 1, 1>}, {transform_indices = @transform_5, window_bounds = array<i64: 8, 1>}]} {
    %c0_i32 = arith.constant 0 : i32
    %0 = arith.cmpi eq, %arg1, %c0_i32 : i32
    %1 = arith.extui %0 : i1 to i32
    %c0_i32_0 = arith.constant 0 : i32
    %2 = arith.cmpi ne, %1, %c0_i32_0 : i32
    scf.if %2 {
      %cst_16 = arith.constant 0.000000e+00 : f32
      %22 = vector.broadcast %cst_16 : f32 to vector<8x1xf32>
      %c0_17 = arith.constant 0 : index
      %c0_18 = arith.constant 0 : index
      %23 = vector.load %arg8[%c0_17, %c0_18] : memref<8x1xf32, #tpu.memory_space<vmem>>, vector<8x1xf32>
      tpu.vector_store %arg8[%c0_17, %c0_18], %22 {strides = array<i32>} : memref<8x1xf32, #tpu.memory_space<vmem>>, vector<8x1xf32>,
    } else {
    }
    %c0 = arith.constant 0 : index
    %c0_1 = arith.constant 0 : index
    %3 = vector.load %arg2[%c0, %c0_1] : memref<8x128xf32, #tpu.memory_space<vmem>>, vector<8x128xf32>
    %c0_2 = arith.constant 0 : index
    %c0_3 = arith.constant 0 : index
    %4 = vector.load %arg3[%c0_2, %c0_3] : memref<128x128xf32, #tpu.memory_space<vmem>>, vector<128x128xf32>
    %cst = arith.constant dense<0.000000e+00> : vector<8x128xf32>
    %5 = tpu.matmul %3, %4, %cst {dimension_numbers = #tpu.dot_dimension_numbers<[1], [0], [0], [1], [0, 0, 1, 1], [], []>} : vector<8x128xf32>, vector<128x128xf32>, vector<8x128xf32> -> vector<8x128xf32>
    %c0_4 = arith.constant 0 : index
    %c0_5 = arith.constant 0 : index
    %6 = vector.load %arg4[%c0_4, %c0_5] : memref<1x128xf32, #tpu.memory_space<vmem>>, vector<1x128xf32>
    %7 = vector.broadcast %6 : vector<1x128xf32> to vector<8x128xf32>
    %8 = arith.addf %5, %7 : vector<8x128xf32>
    %cst_6 = arith.constant 0.000000e+00 : f32
    %9 = vector.broadcast %cst_6 : f32 to vector<8x128xf32>
    %10 = arith.maximumf %8, %9 : vector<8x128xf32>
    %c0_7 = arith.constant 0 : index
    %c0_8 = arith.constant 0 : index
    %11 = vector.load %arg8[%c0_7, %c0_8] : memref<8x1xf32, #tpu.memory_space<vmem>>, vector<8x1xf32>
    %c0_9 = arith.constant 0 : index
    %c0_10 = arith.constant 0 : index
    %12 = vector.load %arg5[%c0_9, %c0_10] : memref<1x128xf32, #tpu.memory_space<vmem>>, vector<1x128xf32>
    %13 = vector.broadcast %12 : vector<1x128xf32> to vector<8x128xf32>
    %14 = arith.mulf %10, %13 : vector<8x128xf32>
    %cst_11 = arith.constant dense<0.000000e+00> : vector<8xf32>
    %15 = vector.multi_reduction <add>, %14, %cst_11 [1] : vector<8x128xf32> to vector<8xf32>
    %16 = vector.shape_cast %15 : vector<8xf32> to vector<8x1xf32>
    %17 = arith.addf %11, %16 : vector<8x1xf32>
    %c0_12 = arith.constant 0 : index
    %c0_13 = arith.constant 0 : index
    %18 = vector.load %arg8[%c0_12, %c0_13] : memref<8x1xf32, #tpu.memory_space<vmem>>, vector<8x1xf32>
    tpu.vector_store %arg8[%c0_12, %c0_13], %17 {strides = array<i32>} : memref<8x1xf32, #tpu.memory_space<vmem>>, vector<8x1xf32>,
    %c0_i32_14 = arith.constant 0 : i32
    %19 = arith.cmpi eq, %arg1, %c0_i32_14 : i32
    %20 = arith.extui %19 : i1 to i32
    %c0_i32_15 = arith.constant 0 : i32
    %21 = arith.cmpi ne, %20, %c0_i32_15 : i32
    scf.if %21 {
      %c0_16 = arith.constant 0 : index
      %c0_17 = arith.constant 0 : index
      %22 = vector.load %arg8[%c0_16, %c0_17] : memref<8x1xf32, #tpu.memory_space<vmem>>, vector<8x1xf32>
      %c0_18 = arith.constant 0 : index
      %c0_19 = arith.constant 0 : index
      %23 = memref.load %arg6[%c0_18, %c0_19] : memref<1x1xf32, #tpu.memory_space<smem>>
      %24 = vector.broadcast %23 : f32 to vector<8x1xf32>
      %25 = arith.addf %22, %24 : vector<8x1xf32>
      %26 = math.tanh %25 : vector<8x1xf32>
      %c0_20 = arith.constant 0 : index
      %c0_21 = arith.constant 0 : index
      %27 = vector.load %arg7[%c0_20, %c0_21] : memref<8x1xf32, #tpu.memory_space<vmem>>, vector<8x1xf32>
      tpu.vector_store %arg7[%c0_20, %c0_21], %26 {strides = array<i32>} : memref<8x1xf32, #tpu.memory_space<vmem>>, vector<8x1xf32>,
    } else {
    }
    return
  }
  func.func @transform_0(%arg0: i32, %arg1: i32) -> (i32, i32) {
    %c0_i32 = arith.constant 0 : i32
    %c0_i32_0 = arith.constant 0 : i32
    return %arg0, %c0_i32 : i32, i32
  }
  func.func @transform_1(%arg0: i32, %arg1: i32) -> (i32, i32) {
    %c0_i32 = arith.constant 0 : i32
    %c0_i32_0 = arith.constant 0 : i32
    return %c0_i32, %arg1 : i32, i32
  }
  func.func @transform_2(%arg0: i32, %arg1: i32) -> (i32, i32) {
    %c0_i32 = arith.constant 0 : i32
    %c0_i32_0 = arith.constant 0 : i32
    return %c0_i32, %arg1 : i32, i32
  }
  func.func @transform_3(%arg0: i32, %arg1: i32) -> (i32, i32) {
    %c0_i32 = arith.constant 0 : i32
    %c0_i32_0 = arith.constant 0 : i32
    return %c0_i32, %arg1 : i32, i32
  }
  func.func @transform_4(%arg0: i32, %arg1: i32) -> (i32, i32) {
    %c0_i32 = arith.constant 0 : i32
    %c0_i32_0 = arith.constant 0 : i32
    %c0_i32_1 = arith.constant 0 : i32
    return %c0_i32, %c0_i32_0 : i32, i32
  }
  func.func @transform_5(%arg0: i32, %arg1: i32) -> (i32, i32) {
    %c0_i32 = arith.constant 0 : i32
    %c0_i32_0 = arith.constant 0 : i32
    return %arg0, %c0_i32 : i32, i32
  }
}

</mosaic_0001>

<bundles_post_ra>
// kernel: tpu_custom_call.1
= control target key start
LH: loop header
LB: loop body
LE: loop exit
PB: predicated region body
PF: predicated region fallthrough
CT: control target
= control target key end

     0   :  { %11 = vsyncpa [#allocation5], 0  ;;  %s340_s0 = inlined_call_operand.hbm [shape: f32[8,128], index: 0, kind: input, shape index: {}]   ;;  %s341_s1 = inlined_call_operand.hbm [shape: f32[128,128], index: 1, kind: input, shape index: {}]   ;;  %s342_s2 = inlined_call_operand.vmem [shape: f32[1,128], index: 2, kind: input, shape index: {}]   ;;  %s343_s3 = inlined_call_operand.vmem [shape: f32[1,128], index: 3, kind: input, shape index: {}]   ;;  %s344_s4 = inlined_call_operand.<no memory space> [shape: f32[1,1], index: 4, kind: input, shape index: {}]   ;;  %s345_s5 = inlined_call_operand.vmem [shape: f32[8,1], index: 5, kind: output, shape index: {}]  }
   0x1   :  { %12 = vsyncpa [#allocation7], 0  ;;  %s283_s18 = smov [#allocation4]   ;;  %s284_s20 = smov [#allocation6]  }
   0x2   :  { %s19_s19 = sshll.u32 %s283_s18, 4  ;;  %s28_s21 = sshll.u32 %s284_s20, 4  ;;  %s20_s19 = int_to_ptr.vmem [resolvable:$true] %s19_s19  ;;  %s29_s21 = int_to_ptr.vmem [resolvable:$true] %s28_s21 }
   0x3   :  { %s247_s22 = scalar_lea.vmem %s20_s19, 128  ;;  %p252_p1 = scmp.lt.s32.totalorder %s20_s19, %s20_s19 }
   0x4   :  { %p248_p0 = scmp.ne.s32.totalorder %s20_s19, %s247_s22  ;;  %p253_p2 = scmp.lt.s32.totalorder %s247_s22, %s247_s22 }
   0x6   :  { %p254_p3 = por %p253_p2, %p252_p1 }
   0x8   :  { %p255_p4 = pnand %p254_p3, %p248_p0 }
   0xa   :  { %258 = shalt.err (!%p255_p4)
}
   0xb   :  { %22 = dma.hbm_to_vmem [thread:$0]  %s340_s0, 128, %s20_s19, [#allocation5]  }
   0xc   :  { %s267_s25 = scalar_lea.vmem %s29_s21, 2048  ;;  %p272_p6 = scmp.lt.s32.totalorder %s29_s21, %s29_s21 }
   0xd   :  { %p268_p5 = scmp.ne.s32.totalorder %s29_s21, %s267_s25  ;;  %p273_p7 = scmp.lt.s32.totalorder %s267_s25, %s267_s25 }
   0xf   :  { %p274_p8 = por %p273_p7, %p272_p6 }
  0x11   :  { %p275_p9 = pnand %p274_p8, %p268_p5 }
  0x13   :  { %278 = shalt.err (!%p275_p9)
}
  0x14   :  { %s285_s26 = smov 128   ;;  %s286_s27 = smov 8  }
  0x15   :  { %34 = dma.hbm_to_vmem [thread:$0]  %s341_s1, 2048, %s29_s21, [#allocation7], %s285_s26, %s285_s26, %s286_s27  }
  0x16   :  { %279 = dma.done.wait [#allocation5], 128  }
  0x17   :  { %280 = vsyncadd [#allocation5], 4294967168 }
  0x18   :  { %281 = dma.done.wait [#allocation7], 2048  }
  0x19   :  { %282 = vsyncadd [#allocation7], 4294965248  ;;  %v287_v0 = vmov 0.0   ;;  %vm288_vm0 = vmmov 0   ;;  %v69_v1 = vld [vmem:[#allocation6 + $0x78] sm:$0xff]  ;;  %v68_v2 = vld [vmem:[#allocation6 + $0x70] sm:$0xff]  ;;  %v167_v28 = vstv %s344_s4 }
  0x1a   :  { %196 = vmatprep.subr.mxu0 %v287_v0  ;;  %228 = vmatprep.mubr.msk.f32.mxu0 %vm288_vm0, %v287_v0  ;;  %v67_v3 = vld [vmem:[#allocation6 + $0x68] sm:$0xff]  ;;  %v66_v4 = vld [vmem:[#allocation6 + $0x60] sm:$0xff]  ;;  %v65_v5 = vld [vmem:[#allocation6 + $0x58] sm:$0xff]  ;;  %vm51_vm1 = vcmask 7168  }
  0x1b   :  { %197 = vmatpush3.msra.mxu0 %v69_v1  ;;  %v64_v6 = vld [vmem:[#allocation6 + $0x50] sm:$0xff]  ;;  %v63_v7 = vld [vmem:[#allocation6 + $0x48] sm:$0xff]  ;;  %v62_v8 = vld [vmem:[#allocation6 + $0x40] sm:$0xff]  ;;  %52 = vst.msk [vmem:[#allocation2] sm:$0xff] %vm51_vm1, %v287_v0 }
  0x1c   :  { %198 = vmatprep.subr.mxu0 %v287_v0  ;;  %v61_v9 = vld [vmem:[#allocation6 + $0x38] sm:$0xff]  ;;  %v60_v10 = vld [vmem:[#allocation6 + $0x30] sm:$0xff]  ;;  %v59_v11 = vld [vmem:[#allocation6 + $0x28] sm:$0xff] }
  0x1d   :  { %199 = vmatpush3.msra.mxu0 %v68_v2  ;;  %v58_v12 = vld [vmem:[#allocation6 + $0x20] sm:$0xff]  ;;  %v57_v13 = vld [vmem:[#allocation6 + $0x18] sm:$0xff]  ;;  %v56_v14 = vld [vmem:[#allocation6 + $0x10] sm:$0xff] }
  0x1e   :  { %200 = vmatprep.subr.mxu0 %v287_v0  ;;  %v55_v15 = vld [vmem:[#allocation6 + $0x8] sm:$0xff]  ;;  %v54_v16 = vld [vmem:[#allocation6] sm:$0xff]  ;;  %v53_v17 = vld [vmem:[#allocation4] sm:$0xff] }
  0x1f   :  { %201 = vmatpush3.msra.mxu0 %v67_v3  ;;  %v177_v18 = vld [vmem:[%s342_s2] ss:$0 sm:$0xff] }
  0x20   :  { %202 = vmatprep.subr.mxu0 %v287_v0  ;;  %v178_v22 = vld [vmem:[%s343_s3] ss:$0 sm:$0xff] }
  0x21   :  { %203 = vmatpush3.msra.mxu0 %v66_v4 }
  0x22   :  { %204 = vmatprep.subr.mxu0 %v287_v0  ;;  %v148_v25 = vld [vmem:[#allocation2] sm:$0xff] }
  0x23   :  { %205 = vmatpush3.msra.mxu0 %v65_v5 }
  0x24   :  { %206 = vmatprep.subr.mxu0 %v287_v0 }
  0x25   :  { %207 = vmatpush3.msra.mxu0 %v64_v6 }
  0x26   :  { %208 = vmatprep.subr.mxu0 %v287_v0 }
  0x27   :  { %209 = vmatpush3.msra.mxu0 %v63_v7 }
  0x28   :  { %210 = vmatprep.subr.mxu0 %v287_v0 }
  0x29   :  { %211 = vmatpush3.msra.mxu0 %v62_v8 }
  0x2a   :  { %212 = vmatprep.subr.mxu0 %v287_v0 }
  0x2b   :  { %213 = vmatpush3.msra.mxu0 %v61_v9 }
  0x2c   :  { %214 = vmatprep.subr.mxu0 %v287_v0 }
  0x2d   :  { %215 = vmatpush3.msra.mxu0 %v60_v10 }
  0x2e   :  { %216 = vmatprep.subr.mxu0 %v287_v0 }
  0x2f   :  { %217 = vmatpush3.msra.mxu0 %v59_v11 }
  0x30   :  { %218 = vmatprep.subr.mxu0 %v287_v0 }
  0x31   :  { %219 = vmatpush3.msra.mxu0 %v58_v12 }
  0x32   :  { %220 = vmatprep.subr.mxu0 %v287_v0 }
  0x33   :  { %221 = vmatpush3.msra.mxu0 %v57_v13 }
  0x34   :  { %222 = vmatprep.subr.mxu0 %v287_v0 }
  0x35   :  { %223 = vmatpush3.msra.mxu0 %v56_v14 }
  0x36   :  { %224 = vmatprep.subr.mxu0 %v287_v0 }
  0x37   :  { %225 = vmatpush3.msra.mxu0 %v55_v15 }
  0x38   :  { %226 = vmatprep.subr.mxu0 %v287_v0 }
  0x39   :  { %227 = vmatpush3.msra.mxu0 %v54_v16 }
  0x3a   :  { %229 = vmatmul.mubr.f32.vlgmr.msra.gmra.mxu0 %v53_v17 }
  0xfa   :  { %v143_v19 = vpop.f32.mrf.mxu0 }
  0xfb   :  { %v144_v20 = vadd.f32 %v177_v18, %v143_v19 }
  0xfc   :  { %v230_v21 = vpop.f32.mrf.mxu0 }
  0xfd   :  { %v147_v23 = vmax.f32 %v144_v20, 0.0 }
  0xff   :  { %v156_v24 = vmul.f32 %v178_v22, %v147_v23 }
 0x101   :  { %157 = vadd.xlane.f32.xlu0 %v156_v24 }
 0x18a   :  { %v158_v26 = vpop.xlane.xlu0 %157 }
 0x18b   :  { %v159_v27 = vadd.f32 %v158_v26, %v148_v25 }
 0x18d   :  { %161 = vst.msk [vmem:[#allocation2] sm:$0xff] %vm51_vm1, %v159_v27 }
 0x194   :  { %v165_v29 = vld [vmem:[#allocation2] sm:$0xff] }
 0x195   :  { %v168_v30 = vadd.f32 %v167_v28, %v165_v29 }
 0x197   :  { %237 = vtanh.f32 %v168_v30 }
 0x1a4   :  { %v238_v31 = vpop.eup %237 }
 0x1a5   :  { %170 = vst.msk [vmem:[%s345_s5] sm:$0xff] %vm51_vm1, %v238_v31 }
 0x1a6   :  { %175 = vsyncpa [#allocation5], 1 }
 0x1a7   :  { %176 = vsyncpa [#allocation7], 1 }

</bundles_post_ra>
